<compile_context>
chip_gen: v7x
topology: tpu7x:2x2x1
jax: 0.10.0
libtpu: 0.0.40
codegen_flags: <defaults>
</compile_context>

<pallas_src>
import jax
import jax.numpy as jnp
from jax.experimental import pallas as pl
from jax.experimental.pallas import tpu as pltpu

# Only split the copy into several DMA chunks (so v7x's two TensorCores can
# each drive disjoint halves) when there is enough data for the split to
# matter; below this threshold a single DMA is issued.
_SPLIT_MIN_BYTES = 4 * 1024 * 1024
_MAX_CHUNKS = 4


def _flatten_pallas_copy(x2: jax.Array) -> jax.Array:
    """HBM->HBM DMA copy of a (n, flat) array (no VMEM staging)."""
    n, flat = x2.shape
    itemsize = jnp.dtype(x2.dtype).itemsize
    total_bytes = n * flat * itemsize

    if n >= 2 and total_bytes > _SPLIT_MIN_BYTES:
        num_chunks = min(_MAX_CHUNKS, n)
    else:
        num_chunks = 1

    chunk_rows = -(-n // num_chunks)        # ceil(n / num_chunks), static
    num_full = n // chunk_rows              # number of full-size chunks
    tail = n - num_full * chunk_rows        # leftover rows (static python int)
    grid = (num_full + (1 if tail else 0),)

    def kernel(x_hbm, o_hbm, sem):
        i = pl.program_id(0)

        def copy_main():
            start = i * chunk_rows
            cp = pltpu.make_async_copy(
                x_hbm.at[pl.ds(start, chunk_rows)],
                o_hbm.at[pl.ds(start, chunk_rows)],
                sem,
            )
            cp.start()
            cp.wait()

        def copy_tail():
            cp = pltpu.make_async_copy(
                x_hbm.at[pl.ds(n - tail, tail)],
                o_hbm.at[pl.ds(n - tail, tail)],
                sem,
            )
            cp.start()
            cp.wait()

        if tail == 0:
            # Every grid step copies a full-size chunk; no masking needed.
            copy_main()
        else:
            pl.when(i < num_full)(copy_main)
            pl.when(i == num_full)(copy_tail)

    return pl.pallas_call(
        kernel,
        out_shape=jax.ShapeDtypeStruct((n, flat), x2.dtype),
        grid=grid,
        in_specs=[pl.BlockSpec(memory_space=pl.ANY)],
        out_specs=pl.BlockSpec(memory_space=pl.ANY),
        scratch_shapes=[pltpu.SemaphoreType.DMA(())],
        compiler_params=pltpu.CompilerParams(
            dimension_semantics=("parallel",),  # v7x: 2 TCs split the chunks
        ),
    )(x2)


def flatten(x: jax.Array) -> jax.Array:
    """Pallas equivalent of x.view(x.size(0), -1) for a contiguous NCHW tensor."""
    n = x.shape[0]
    flat = 1
    for d in x.shape[1:]:
        flat *= d

    # Metadata-only reshape in the wrapper (matches torch .view on contiguous
    # NCHW); the Pallas kernel is then a pure HBM->HBM copy of (n, flat).
    x2 = jnp.reshape(x, (n, flat))
    return _flatten_pallas_copy(x2)


if __name__ == "__main__":
    key = jax.random.PRNGKey(0)
    # Small NCHW input consistent with a CIFAR-style conv feature map.
    x = jax.random.normal(key, (2, 4, 16, 16), dtype=jnp.float32)

    out = flatten(x)
    out = jax.block_until_ready(out)

    # Correctness check against plain-JAX reshape (same semantics as torch .view).
    ref = x.reshape(x.shape[0], -1)
    assert out.shape == (2, 4 * 16 * 16), out.shape
    assert jnp.array_equal(out, ref), "Flatten mismatch vs reference reshape"

    print("KERNEL_OK")
</pallas_src>

<mosaic_0001>
module attributes {stable_mosaic.version = 11 : i64} {
  func.func @kernel(%arg0: i32, %arg1: memref<2x1024xf32, #tpu.memory_space<any>>, %arg2: memref<2x1024xf32, #tpu.memory_space<any>>, %arg3: memref<!tpu.dma_semaphore, #tpu.memory_space<semaphore_mem>>) attributes {dimension_semantics = [#tpu.dimension_semantics<parallel>], iteration_bounds = array<i64: 1>, scalar_prefetch = 0 : i64, scratch_operands = 1 : i64, tpu.core_type = #tpu.core_type<tc>, window_params = [{}, {}]} {
    %c2_i32 = arith.constant 2 : i32
    %0 = arith.muli %arg0, %c2_i32 : i32
    %c0_i32 = arith.constant 0 : i32
    %1 = tpu.memref_slice %arg1[%0, %c0_i32] : memref<2x1024xf32, #tpu.memory_space<any>> -> memref<2x1024xf32, #tpu.memory_space<any>>
    %c0_i32_0 = arith.constant 0 : i32
    %2 = tpu.memref_slice %arg2[%0, %c0_i32_0] : memref<2x1024xf32, #tpu.memory_space<any>> -> memref<2x1024xf32, #tpu.memory_space<any>>
    tpu.enqueue_dma source(%1 : memref<2x1024xf32, #tpu.memory_space<any>>) target(%2 : memref<2x1024xf32, #tpu.memory_space<any>>) target_semaphore(%arg3 : memref<!tpu.dma_semaphore, #tpu.memory_space<semaphore_mem>>)
    %c0_i32_1 = arith.constant 0 : i32
    %3 = tpu.memref_slice %arg1[%0, %c0_i32_1] : memref<2x1024xf32, #tpu.memory_space<any>> -> memref<2x1024xf32, #tpu.memory_space<any>>
    %c0_i32_2 = arith.constant 0 : i32
    %4 = tpu.memref_slice %arg2[%0, %c0_i32_2] : memref<2x1024xf32, #tpu.memory_space<any>> -> memref<2x1024xf32, #tpu.memory_space<any>>
    tpu.wait_dma2 semaphore(%arg3 : memref<!tpu.dma_semaphore, #tpu.memory_space<semaphore_mem>>) src(%3 : memref<2x1024xf32, #tpu.memory_space<any>>) dst(%4 : memref<2x1024xf32, #tpu.memory_space<any>>)
    return
  }
}

</mosaic_0001>

<bundles_post_ra>
// kernel: tpu_custom_call.1
= control target key start
LH: loop header
LB: loop body
LE: loop exit
PB: predicated region body
PF: predicated region fallthrough
CT: control target
= control target key end

     0   :  { %s47_s6 = smov [#allocation2]   ;;  %s48_s7 = smov [#allocation3]   ;;  %s66_s0 = inlined_call_operand.hbm [shape: f32[2,1024], index: 0, kind: input, shape index: {}]   ;;  %s67_s1 = inlined_call_operand.hbm [shape: f32[2,1024], index: 1, kind: output, shape index: {}]  }
   0x1   :  { %s49_s8 = smov 0  }
   0x2   :  { %26 = dma.general %s66_s0, 256, %s67_s1, %s47_s6, %s48_s7, [#allocation4], %s49_s8, 0  }
   0x3   :  { %45 = dma.done.wait [#allocation2], 256 }
   0x4   :  { %46 = vsyncadd [#allocation2], 4294967040 }
   0x5   :  { %31 = vsyncmov [#allocation2] }
   0x8   :  { %s32_s13 = vpop.sfrf %31 }
   0x9   :  { %p41_p0 = scmp.ne.s32.totalorder %s32_s13, 0 }
   0xb   :  { %36 = shalt.err (%p41_p0)  }

</bundles_post_ra>
